<compile_context>
chip_gen: v5e
topology: v5e:2x2
jax: 0.10.0
libtpu: 0.0.40
codegen_flags: <defaults>
</compile_context>

<pallas_src>
import math
import functools

import jax
import jax.numpy as jnp
from jax.experimental import pallas as pl
from jax.experimental.pallas import tpu as pltpu


# ----------------------------- fused Pallas kernel -------------------------- #

def _bottleneck_kernel(x_ref, w1_ref, s1_ref, b1_ref,
                       w2_ref, s2_ref, b2_ref,
                       w3_ref, s3_ref, b3_ref,
                       o_ref, pad_ref, *, H, W, DC):
    x = x_ref[...]                                            # (H*W, Cin) f32

    # ---- conv1 (1x1) + bn1 + relu ----
    y1 = jnp.dot(x, w1_ref[...], preferred_element_type=jnp.float32)
    y1 = jnp.maximum(y1 * s1_ref[...] + b1_ref[...], 0.0)     # (H*W, DC)

    # ---- write into zero-padded VMEM tile (halo = conv2's zero padding) ----
    # Zeroed every step so it is correct under megacore ("parallel") sharding.
    pad_ref[...] = jnp.zeros_like(pad_ref)
    pad_ref[1:H + 1, 1:W + 1, :] = y1.reshape(H, W, DC)

    # ---- conv2 (3x3, groups=C) as ONE block-diagonal matmul over 9 taps ----
    taps = [pad_ref[ky:ky + H, kx:kx + W, :].reshape(H * W, DC)
            for ky in range(3) for kx in range(3)]
    x9 = jnp.concatenate(taps, axis=-1)                       # (H*W, 9*DC)
    y2 = jnp.dot(x9, w2_ref[...], preferred_element_type=jnp.float32)
    y2 = jnp.maximum(y2 * s2_ref[...] + b2_ref[...], 0.0)     # (H*W, DC)

    # ---- conv3 (1x1) + bn3 + residual + relu ----
    y3 = jnp.dot(y2, w3_ref[...], preferred_element_type=jnp.float32)
    y3 = y3 * s3_ref[...] + b3_ref[...] + x                   # residual (Cin == C4)
    o_ref[...] = jnp.maximum(y3, 0.0).astype(o_ref.dtype)


# ------------------------------ forward pass -------------------------------- #

def bottleneck_forward(x_nchw, p):
    N, Cin, H, W = x_nchw.shape
    DC = p["w1"].shape[1]
    C4 = p["w3"].shape[1]
    assert Cin == C4, "residual add requires inplanes == planes * 4 (downsample=None)"
    HW = H * W

    # NCHW -> (N, H*W, C): channels on the lane axis, spatial flattened to M.
    x2d = jnp.transpose(x_nchw, (0, 2, 3, 1)).reshape(N, HW, Cin)

    kernel = functools.partial(_bottleneck_kernel, H=H, W=W, DC=DC)

    def full(shape):
        # tiny weight/BN operands: whole-array block, constant block index
        return pl.BlockSpec(shape, lambda n, _s=shape: (0,) * len(_s))

    out = pl.pallas_call(
        kernel,
        out_shape=jax.ShapeDtypeStruct((N, HW, C4), jnp.float32),
        grid_spec=pltpu.PrefetchScalarGridSpec(
            num_scalar_prefetch=0,
            grid=(N,),
            in_specs=[
                pl.BlockSpec((None, HW, Cin), lambda n: (n, 0, 0)),  # x / residual
                full((Cin, DC)), full((1, DC)), full((1, DC)),       # conv1 + bn1
                full((9 * DC, DC)), full((1, DC)), full((1, DC)),    # conv2 + bn2
                full((DC, C4)), full((1, C4)), full((1, C4)),        # conv3 + bn3
            ],
            out_specs=pl.BlockSpec((None, HW, C4), lambda n: (n, 0, 0)),
            scratch_shapes=[pltpu.VMEM((H + 2, W + 2, DC), jnp.float32)],
        ),
        compiler_params=pltpu.CompilerParams(
            dimension_semantics=("parallel",)),
    )(x2d, p["w1"], p["s1"], p["b1"], p["w2bd"], p["s2"], p["b2"],
      p["w3"], p["s3"], p["b3"])

    return jnp.transpose(out.reshape(N, H, W, C4), (0, 3, 1, 2))   # back to NCHW


# --------------------------- parameters & folding --------------------------- #

def init_params(key, inplanes, planes, baseWidth, cardinality):
    D = int(math.floor(planes * (baseWidth / 64)))
    C = cardinality
    DC = D * C
    C4 = planes * 4
    ks = jax.random.split(key, 15)

    def rnd(k, shape, scale=0.1):
        return (scale * jax.random.normal(k, shape)).astype(jnp.float32)

    def bn_params(kg, kb, km, kv, ch):
        gamma = (0.5 + jax.random.uniform(kg, (ch,))).astype(jnp.float32)
        beta = rnd(kb, (ch,))
        mean = rnd(km, (ch,))
        var = (0.5 + jax.random.uniform(kv, (ch,))).astype(jnp.float32)
        return gamma, beta, mean, var

    return dict(
        w1=rnd(ks[0], (DC, inplanes, 1, 1)),   # PyTorch OIHW
        w2=rnd(ks[1], (DC, D, 3, 3)),          # grouped, OIHW (I = D per group)
        w3=rnd(ks[2], (C4, DC, 1, 1)),
        bn1=bn_params(ks[3], ks[4], ks[5], ks[6], DC),
        bn2=bn_params(ks[7], ks[8], ks[9], ks[10], DC),
        bn3=bn_params(ks[11], ks[12], ks[13], ks[14], C4),
        C=C, D=D,
    )


def _fold_bn(bn, eps=1e-5):
    gamma, beta, mean, var = bn
    scale = gamma / jnp.sqrt(var + eps)
    bias = beta - mean * scale
    return (scale.reshape(1, -1).astype(jnp.float32),
            bias.reshape(1, -1).astype(jnp.float32))


def prep_kernel_params(raw):
    D, C = raw["D"], raw["C"]
    DC = D * C
    w1 = raw["w1"][:, :, 0, 0].T                                    # [Cin, DC]
    # Grouped 3x3 -> block-diagonal [9*DC, DC]: tap-major rows, off-group zeros.
    w2 = raw["w2"].reshape(C, D, D, 3, 3)                           # [g, o, i, ky, kx]
    blocks = jnp.transpose(w2, (3, 4, 0, 2, 1)).reshape(9, C, D, D)  # [t, g, i, o]
    w2bd = jnp.einsum("tgio,gh->tgiho", blocks,
                      jnp.eye(C, dtype=jnp.float32)).reshape(9 * DC, DC)
    w3 = raw["w3"][:, :, 0, 0].T                                    # [DC, C4]
    s1, b1 = _fold_bn(raw["bn1"])
    s2, b2 = _fold_bn(raw["bn2"])
    s3, b3 = _fold_bn(raw["bn3"])
    return dict(w1=w1, w2bd=w2bd, w3=w3,
                s1=s1, b1=b1, s2=s2, b2=b2, s3=s3, b3=b3, C=C, D=D)


# ------------------------------ JAX reference ------------------------------- #

def reference_forward(x, raw, eps=1e-5):
    hp = jax.lax.Precision.HIGHEST

    def conv(x, w, stride=1, padding=0, groups=1):
        return jax.lax.conv_general_dilated(
            x, w, (stride, stride), ((padding, padding), (padding, padding)),
            dimension_numbers=("NCHW", "OIHW", "NCHW"),
            feature_group_count=groups, precision=hp)

    def bn(x, p):
        gamma, beta, mean, var = p
        scale = gamma / jnp.sqrt(var + eps)
        bias = beta - mean * scale
        return x * scale[None, :, None, None] + bias[None, :, None, None]

    out = jax.nn.relu(bn(conv(x, raw["w1"]), raw["bn1"]))
    out = jax.nn.relu(bn(conv(out, raw["w2"], stride=1, padding=1,
                              groups=raw["C"]), raw["bn2"]))
    out = bn(conv(out, raw["w3"]), raw["bn3"])
    return jax.nn.relu(out + x)


# ---------------------------------- main ------------------------------------ #

if __name__ == "__main__":
    # Bottleneck(inplanes=16, planes=4, baseWidth=64, cardinality=2, stride=1)
    # -> D = 4, D*C = 8, output channels = planes*4 = 16 (== inplanes).
    inplanes, planes, baseWidth, cardinality = 16, 4, 64, 2
    N, H, W = 2, 8, 8

    key = jax.random.PRNGKey(0)
    kx, kp = jax.random.split(key)
    x = (0.5 * jax.random.normal(kx, (N, inplanes, H, W))).astype(jnp.float32)

    raw = init_params(kp, inplanes, planes, baseWidth, cardinality)
    kparams = prep_kernel_params(raw)

    out = jax.block_until_ready(bottleneck_forward(x, kparams))
    ref = jax.block_until_ready(reference_forward(x, raw))

    assert out.shape == (N, planes * 4, H, W), out.shape
    max_err = float(jnp.max(jnp.abs(out - ref)))
    assert max_err < 2e-2, f"max abs err {max_err}"

    print("KERNEL_OK")
</pallas_src>

<mosaic_0001>
module attributes {stable_mosaic.version = 11 : i64} {
  func.func @_bottleneck_kernel(%arg0: i32, %arg1: memref<1x64x16xf32, #tpu.memory_space<vmem>>, %arg2: memref<16x8xf32, #tpu.memory_space<vmem>>, %arg3: memref<1x8xf32, #tpu.memory_space<vmem>>, %arg4: memref<1x8xf32, #tpu.memory_space<vmem>>, %arg5: memref<72x8xf32, #tpu.memory_space<vmem>>, %arg6: memref<1x8xf32, #tpu.memory_space<vmem>>, %arg7: memref<1x8xf32, #tpu.memory_space<vmem>>, %arg8: memref<8x16xf32, #tpu.memory_space<vmem>>, %arg9: memref<1x16xf32, #tpu.memory_space<vmem>>, %arg10: memref<1x16xf32, #tpu.memory_space<vmem>>, %arg11: memref<1x64x16xf32, #tpu.memory_space<vmem>>, %arg12: memref<10x10x8xf32, #tpu.memory_space<vmem>>) attributes {dimension_semantics = [#tpu.dimension_semantics<parallel>], iteration_bounds = array<i64: 2>, scalar_prefetch = 0 : i64, scratch_operands = 1 : i64, tpu.core_type = #tpu.core_type<tc>, window_params = [{transform_indices = @transform_0, window_bounds = array<i64: 1, 64, 16>}, {pipeline_mode = #tpu.pipeline_mode<synchronous>, transform_indices = @transform_1, window_bounds = array<i64: 16, 8>}, {pipeline_mode = #tpu.pipeline_mode<synchronous>, transform_indices = @transform_2, window_bounds = array<i64: 1, 8>}, {pipeline_mode = #tpu.pipeline_mode<synchronous>, transform_indices = @transform_3, window_bounds = array<i64: 1, 8>}, {pipeline_mode = #tpu.pipeline_mode<synchronous>, transform_indices = @transform_4, window_bounds = array<i64: 72, 8>}, {pipeline_mode = #tpu.pipeline_mode<synchronous>, transform_indices = @transform_5, window_bounds = array<i64: 1, 8>}, {pipeline_mode = #tpu.pipeline_mode<synchronous>, transform_indices = @transform_6, window_bounds = array<i64: 1, 8>}, {pipeline_mode = #tpu.pipeline_mode<synchronous>, transform_indices = @transform_7, window_bounds = array<i64: 8, 16>}, {pipeline_mode = #tpu.pipeline_mode<synchronous>, transform_indices = @transform_8, window_bounds = array<i64: 1, 16>}, {pipeline_mode = #tpu.pipeline_mode<synchronous>, transform_indices = @transform_9, window_bounds = array<i64: 1, 16>}, {transform_indices = @transform_10, window_bounds = array<i64: 1, 64, 16>}]} {
    %c0 = arith.constant 0 : index
    %c0_0 = arith.constant 0 : index
    %c0_1 = arith.constant 0 : index
    %0 = vector.load %arg1[%c0, %c0_0, %c0_1] : memref<1x64x16xf32, #tpu.memory_space<vmem>>, vector<1x64x16xf32>
    %1 = vector.shape_cast %0 : vector<1x64x16xf32> to vector<64x16xf32>
    %c0_2 = arith.constant 0 : index
    %c0_3 = arith.constant 0 : index
    %2 = vector.load %arg2[%c0_2, %c0_3] : memref<16x8xf32, #tpu.memory_space<vmem>>, vector<16x8xf32>
    %cst = arith.constant dense<0.000000e+00> : vector<64x8xf32>
    %3 = tpu.matmul %1, %2, %cst {dimension_numbers = #tpu.dot_dimension_numbers<[1], [0], [0], [1], [0, 0, 1, 1], [], []>} : vector<64x16xf32>, vector<16x8xf32>, vector<64x8xf32> -> vector<64x8xf32>
    %c0_4 = arith.constant 0 : index
    %c0_5 = arith.constant 0 : index
    %4 = vector.load %arg3[%c0_4, %c0_5] : memref<1x8xf32, #tpu.memory_space<vmem>>, vector<1x8xf32>
    %5 = vector.broadcast %4 : vector<1x8xf32> to vector<64x8xf32>
    %6 = arith.mulf %3, %5 : vector<64x8xf32>
    %c0_6 = arith.constant 0 : index
    %c0_7 = arith.constant 0 : index
    %7 = vector.load %arg4[%c0_6, %c0_7] : memref<1x8xf32, #tpu.memory_space<vmem>>, vector<1x8xf32>
    %8 = vector.broadcast %7 : vector<1x8xf32> to vector<64x8xf32>
    %9 = arith.addf %6, %8 : vector<64x8xf32>
    %cst_8 = arith.constant 0.000000e+00 : f32
    %10 = vector.broadcast %cst_8 : f32 to vector<64x8xf32>
    %11 = arith.maximumf %9, %10 : vector<64x8xf32>
    %cst_9 = arith.constant 0.000000e+00 : f32
    %12 = vector.broadcast %cst_9 : f32 to vector<10x10x8xf32>
    %c0_10 = arith.constant 0 : index
    %c0_11 = arith.constant 0 : index
    %c0_12 = arith.constant 0 : index
    %13 = vector.load %arg12[%c0_10, %c0_11, %c0_12] : memref<10x10x8xf32, #tpu.memory_space<vmem>>, vector<10x10x8xf32>
    tpu.vector_store %arg12[%c0_10, %c0_11, %c0_12], %12 {strides = array<i32>} : memref<10x10x8xf32, #tpu.memory_space<vmem>>, vector<10x10x8xf32>,
    %14 = vector.shape_cast %11 : vector<64x8xf32> to vector<8x8x8xf32>
    %c1 = arith.constant 1 : index
    %c1_13 = arith.constant 1 : index
    %c0_14 = arith.constant 0 : index
    %15 = vector.load %arg12[%c1, %c1_13, %c0_14] : memref<10x10x8xf32, #tpu.memory_space<vmem>>, vector<8x8x8xf32>
    tpu.vector_store %arg12[%c1, %c1_13, %c0_14], %14 {strides = array<i32>} : memref<10x10x8xf32, #tpu.memory_space<vmem>>, vector<8x8x8xf32>,
    %c0_15 = arith.constant 0 : index
    %c0_16 = arith.constant 0 : index
    %c0_17 = arith.constant 0 : index
    %16 = vector.load %arg12[%c0_15, %c0_16, %c0_17] : memref<10x10x8xf32, #tpu.memory_space<vmem>>, vector<8x8x8xf32>
    %17 = vector.shape_cast %16 : vector<8x8x8xf32> to vector<64x8xf32>
    %c0_18 = arith.constant 0 : index
    %c1_19 = arith.constant 1 : index
    %c0_20 = arith.constant 0 : index
    %18 = vector.load %arg12[%c0_18, %c1_19, %c0_20] : memref<10x10x8xf32, #tpu.memory_space<vmem>>, vector<8x8x8xf32>
    %19 = vector.shape_cast %18 : vector<8x8x8xf32> to vector<64x8xf32>
    %c0_21 = arith.constant 0 : index
    %c2 = arith.constant 2 : index
    %c0_22 = arith.constant 0 : index
    %20 = vector.load %arg12[%c0_21, %c2, %c0_22] : memref<10x10x8xf32, #tpu.memory_space<vmem>>, vector<8x8x8xf32>
    %21 = vector.shape_cast %20 : vector<8x8x8xf32> to vector<64x8xf32>
    %c1_23 = arith.constant 1 : index
    %c0_24 = arith.constant 0 : index
    %c0_25 = arith.constant 0 : index
    %22 = vector.load %arg12[%c1_23, %c0_24, %c0_25] : memref<10x10x8xf32, #tpu.memory_space<vmem>>, vector<8x8x8xf32>
    %23 = vector.shape_cast %22 : vector<8x8x8xf32> to vector<64x8xf32>
    %c1_26 = arith.constant 1 : index
    %c1_27 = arith.constant 1 : index
    %c0_28 = arith.constant 0 : index
    %24 = vector.load %arg12[%c1_26, %c1_27, %c0_28] : memref<10x10x8xf32, #tpu.memory_space<vmem>>, vector<8x8x8xf32>
    %25 = vector.shape_cast %24 : vector<8x8x8xf32> to vector<64x8xf32>
    %c1_29 = arith.constant 1 : index
    %c2_30 = arith.constant 2 : index
    %c0_31 = arith.constant 0 : index
    %26 = vector.load %arg12[%c1_29, %c2_30, %c0_31] : memref<10x10x8xf32, #tpu.memory_space<vmem>>, vector<8x8x8xf32>
    %27 = vector.shape_cast %26 : vector<8x8x8xf32> to vector<64x8xf32>
    %c2_32 = arith.constant 2 : index
    %c0_33 = arith.constant 0 : index
    %c0_34 = arith.constant 0 : index
    %28 = vector.load %arg12[%c2_32, %c0_33, %c0_34] : memref<10x10x8xf32, #tpu.memory_space<vmem>>, vector<8x8x8xf32>
    %29 = vector.shape_cast %28 : vector<8x8x8xf32> to vector<64x8xf32>
    %c2_35 = arith.constant 2 : index
    %c1_36 = arith.constant 1 : index
    %c0_37 = arith.constant 0 : index
    %30 = vector.load %arg12[%c2_35, %c1_36, %c0_37] : memref<10x10x8xf32, #tpu.memory_space<vmem>>, vector<8x8x8xf32>
    %31 = vector.shape_cast %30 : vector<8x8x8xf32> to vector<64x8xf32>
    %c2_38 = arith.constant 2 : index
    %c2_39 = arith.constant 2 : index
    %c0_40 = arith.constant 0 : index
    %32 = vector.load %arg12[%c2_38, %c2_39, %c0_40] : memref<10x10x8xf32, #tpu.memory_space<vmem>>, vector<8x8x8xf32>
    %33 = vector.shape_cast %32 : vector<8x8x8xf32> to vector<64x8xf32>
    %34 = tpu.concatenate %17, %19, %21, %23, %25, %27, %29, %31, %33 in 1 : vector<64x8xf32>, vector<64x8xf32>, vector<64x8xf32>, vector<64x8xf32>, vector<64x8xf32>, vector<64x8xf32>, vector<64x8xf32>, vector<64x8xf32>, vector<64x8xf32> -> vector<64x72xf32>
    %c0_41 = arith.constant 0 : index
    %c0_42 = arith.constant 0 : index
    %35 = vector.load %arg5[%c0_41, %c0_42] : memref<72x8xf32, #tpu.memory_space<vmem>>, vector<72x8xf32>
    %cst_43 = arith.constant dense<0.000000e+00> : vector<64x8xf32>
    %36 = tpu.matmul %34, %35, %cst_43 {dimension_numbers = #tpu.dot_dimension_numbers<[1], [0], [0], [1], [0, 0, 1, 1], [], []>} : vector<64x72xf32>, vector<72x8xf32>, vector<64x8xf32> -> vector<64x8xf32>
    %c0_44 = arith.constant 0 : index
    %c0_45 = arith.constant 0 : index
    %37 = vector.load %arg6[%c0_44, %c0_45] : memref<1x8xf32, #tpu.memory_space<vmem>>, vector<1x8xf32>
    %38 = vector.broadcast %37 : vector<1x8xf32> to vector<64x8xf32>
    %39 = arith.mulf %36, %38 : vector<64x8xf32>
    %c0_46 = arith.constant 0 : index
    %c0_47 = arith.constant 0 : index
    %40 = vector.load %arg7[%c0_46, %c0_47] : memref<1x8xf32, #tpu.memory_space<vmem>>, vector<1x8xf32>
    %41 = vector.broadcast %40 : vector<1x8xf32> to vector<64x8xf32>
    %42 = arith.addf %39, %41 : vector<64x8xf32>
    %cst_48 = arith.constant 0.000000e+00 : f32
    %43 = vector.broadcast %cst_48 : f32 to vector<64x8xf32>
    %44 = arith.maximumf %42, %43 : vector<64x8xf32>
    %c0_49 = arith.constant 0 : index
    %c0_50 = arith.constant 0 : index
    %45 = vector.load %arg8[%c0_49, %c0_50] : memref<8x16xf32, #tpu.memory_space<vmem>>, vector<8x16xf32>
    %cst_51 = arith.constant dense<0.000000e+00> : vector<64x16xf32>
    %46 = tpu.matmul %44, %45, %cst_51 {dimension_numbers = #tpu.dot_dimension_numbers<[1], [0], [0], [1], [0, 0, 1, 1], [], []>} : vector<64x8xf32>, vector<8x16xf32>, vector<64x16xf32> -> vector<64x16xf32>
    %c0_52 = arith.constant 0 : index
    %c0_53 = arith.constant 0 : index
    %47 = vector.load %arg9[%c0_52, %c0_53] : memref<1x16xf32, #tpu.memory_space<vmem>>, vector<1x16xf32>
    %48 = vector.broadcast %47 : vector<1x16xf32> to vector<64x16xf32>
    %49 = arith.mulf %46, %48 : vector<64x16xf32>
    %c0_54 = arith.constant 0 : index
    %c0_55 = arith.constant 0 : index
    %50 = vector.load %arg10[%c0_54, %c0_55] : memref<1x16xf32, #tpu.memory_space<vmem>>, vector<1x16xf32>
    %51 = vector.broadcast %50 : vector<1x16xf32> to vector<64x16xf32>
    %52 = arith.addf %49, %51 : vector<64x16xf32>
    %53 = arith.addf %52, %1 : vector<64x16xf32>
    %cst_56 = arith.constant 0.000000e+00 : f32
    %54 = vector.broadcast %cst_56 : f32 to vector<64x16xf32>
    %55 = arith.maximumf %53, %54 : vector<64x16xf32>
    %c0_57 = arith.constant 0 : index
    %c0_58 = arith.constant 0 : index
    %c0_59 = arith.constant 0 : index
    %56 = vector.load %arg11[%c0_57, %c0_58, %c0_59] : memref<1x64x16xf32, #tpu.memory_space<vmem>>, vector<1x64x16xf32>
    %57 = vector.shape_cast %56 : vector<1x64x16xf32> to vector<64x16xf32>
    %58 = vector.shape_cast %55 : vector<64x16xf32> to vector<1x64x16xf32>
    tpu.vector_store %arg11[%c0_57, %c0_58, %c0_59], %58 {strides = array<i32>} : memref<1x64x16xf32, #tpu.memory_space<vmem>>, vector<1x64x16xf32>,
    return
  }
  func.func @transform_0(%arg0: i32) -> (i32, i32, i32) {
    %c0_i32 = arith.constant 0 : i32
    %c0_i32_0 = arith.constant 0 : i32
    %c0_i32_1 = arith.constant 0 : i32
    return %arg0, %c0_i32, %c0_i32_0 : i32, i32, i32
  }
  func.func @transform_1(%arg0: i32) -> (i32, i32) {
    %c0_i32 = arith.constant 0 : i32
    %c0_i32_0 = arith.constant 0 : i32
    %c0_i32_1 = arith.constant 0 : i32
    return %c0_i32, %c0_i32_0 : i32, i32
  }
  func.func @transform_2(%arg0: i32) -> (i32, i32) {
    %c0_i32 = arith.constant 0 : i32
    %c0_i32_0 = arith.constant 0 : i32
    %c0_i32_1 = arith.constant 0 : i32
    return %c0_i32, %c0_i32_0 : i32, i32
  }
  func.func @transform_3(%arg0: i32) -> (i32, i32) {
    %c0_i32 = arith.constant 0 : i32
    %c0_i32_0 = arith.constant 0 : i32
    %c0_i32_1 = arith.constant 0 : i32
    return %c0_i32, %c0_i32_0 : i32, i32
  }
  func.func @transform_4(%arg0: i32) -> (i32, i32) {
    %c0_i32 = arith.constant 0 : i32
    %c0_i32_0 = arith.constant 0 : i32
    %c0_i32_1 = arith.constant 0 : i32
    return %c0_i32, %c0_i32_0 : i32, i32
  }
  func.func @transform_5(%arg0: i32) -> (i32, i32) {
    %c0_i32 = arith.constant 0 : i32
    %c0_i32_0 = arith.constant 0 : i32
    %c0_i32_1 = arith.constant 0 : i32
    return %c0_i32, %c0_i32_0 : i32, i32
  }
  func.func @transform_6(%arg0: i32) -> (i32, i32) {
    %c0_i32 = arith.constant 0 : i32
    %c0_i32_0 = arith.constant 0 : i32
    %c0_i32_1 = arith.constant 0 : i32
    return %c0_i32, %c0_i32_0 : i32, i32
  }
  func.func @transform_7(%arg0: i32) -> (i32, i32) {
    %c0_i32 = arith.constant 0 : i32
    %c0_i32_0 = arith.constant 0 : i32
    %c0_i32_1 = arith.constant 0 : i32
    return %c0_i32, %c0_i32_0 : i32, i32
  }
  func.func @transform_8(%arg0: i32) -> (i32, i32) {
    %c0_i32 = arith.constant 0 : i32
    %c0_i32_0 = arith.constant 0 : i32
    %c0_i32_1 = arith.constant 0 : i32
    return %c0_i32, %c0_i32_0 : i32, i32
  }
  func.func @transform_9(%arg0: i32) -> (i32, i32) {
    %c0_i32 = arith.constant 0 : i32
    %c0_i32_0 = arith.constant 0 : i32
    %c0_i32_1 = arith.constant 0 : i32
    return %c0_i32, %c0_i32_0 : i32, i32
  }
  func.func @transform_10(%arg0: i32) -> (i32, i32, i32) {
    %c0_i32 = arith.constant 0 : i32
    %c0_i32_0 = arith.constant 0 : i32
    %c0_i32_1 = arith.constant 0 : i32
    return %arg0, %c0_i32, %c0_i32_0 : i32, i32, i32
  }
}

</mosaic_0001>

<bundles_post_ra>
// kernel: tpu_custom_call.1
= control target key start
LH: loop header
LB: loop body
LE: loop exit
PB: predicated region body
PF: predicated region fallthrough
CT: control target
= control target key end

     0   :  { %s1315_s13 = smov 0   ;;  %s1710_s0 = inlined_call_operand.vmem [shape: f32[2,64,16], index: 0, kind: input, shape index: {}]   ;;  %s1711_s1 = inlined_call_operand.vmem [shape: f32[16,8], index: 1, kind: input, shape index: {}]   ;;  %s1712_s2 = inlined_call_operand.vmem [shape: f32[1,8], index: 2, kind: input, shape index: {}]   ;;  %s1713_s3 = inlined_call_operand.vmem [shape: f32[1,8], index: 3, kind: input, shape index: {}]   ;;  %s1714_s4 = inlined_call_operand.vmem [shape: f32[72,8], index: 4, kind: input, shape index: {}]   ;;  %s1715_s5 = inlined_call_operand.vmem [shape: f32[1,8], index: 5, kind: input, shape index: {}]   ;;  %s1716_s6 = inlined_call_operand.vmem [shape: f32[1,8], index: 6, kind: input, shape index: {}]   ;;  %s1717_s7 = inlined_call_operand.vmem [shape: f32[8,16], index: 7, kind: input, shape index: {}]   ;;  %s1718_s8 = inlined_call_operand.vmem [shape: f32[1,16], index: 8, kind: input, shape index: {}]   ;;  %s1719_s9 = inlined_call_operand.vmem [shape: f32[1,16], index: 9, kind: input, shape index: {}]   ;;  %s1720_s10 = inlined_call_operand.vmem [shape: f32[2,64,16], index: 10, kind: output, shape index: {}]  }
   0x1 LB: > { %s1174_s14 = sadd.s32 4294967295, %s1249_s13   ;;  %p1178_p0 = scmp.ge.s32.totalorder %s1249_s13, 1  ;;  %s1249_s13 = sphi %s1315_s13, %s20_s13  }
   0x2   : > { %p312_p1 = scmp.lt.s32.totalorder %s1249_s13, 3 }
   0x4   : > { %p313_p2 = pnand %p1178_p0, %p312_p1 }
   0x5   : > { %p350_p3 = scmp.lt.s32.totalorder (!%p313_p2), %s1174_s14, 1  ;;  %s1252_s23 = smov (!%p313_p2), 8  }
   0x6   : > { %316 = sbr.rel (%p313_p2) target bundleno = 713 (0x2c9), region = 60  ;;  %s1253_s24 = smov (!%p313_p2), 16  }
   0x7   : > { %s1254_s29 = smov (!%p313_p2), 40   ;;  %s1255_s30 = smov (!%p313_p2), 24  }
   0x8   : > { %s1256_s11 = smov (!%p313_p2), 32   ;;  %s1257_s12 = smov (!%p313_p2), 56  }
   0x9   : > { %s1258_s15 = smov (!%p313_p2), 64   ;;  %s1259_s16 = smov (!%p313_p2), 48  }
   0xb   : > { %v369_v0 = vld [vmem:[%s1711_s1 + $0x8] sm:$0xff]  ;;  %v368_v1 = vld [vmem:[%s1711_s1] sm:$0xff]  ;;  %s1722_s14 = smov (!%p350_p3, %s1174_s14), 1  ;;  %vm370_vm0 = vcmask 130048   ;;  %vm468_vm1 = vcmask 64512   ;;  %vm470_vm2 = vcmask 58368  }
   0xc   : > { %409 = vmatpush.msra.mxu0 %v369_v0  ;;  %s1209_s19 = sshll.u32 %s1722_s14, 6  ;;  %v1251_v5 = vmov 0.0   ;;  %v1404_v13 = vld [vmem:[%s1712_s2] ss:$0 sm:$0xff]  ;;  %v905_v59 = vld [vmem:[%s1714_s4 + $0x38] sm:$0xff]  ;;  %v904_v60 = vld [vmem:[%s1714_s4 + $0x30] sm:$0xff] }
   0xd   : > { %s1337_s22 = scalar_lea.vmem %s1710_s0, %s1209_s19  ;;  %469 = vst.msk [vmem:[#allocation2] sm:$0xff] %vm468_vm1, %v1251_v5  ;;  %v1409_v14 = vld [vmem:[%s1713_s3] ss:$0 sm:$0xff]  ;;  %v903_v62 = vld [vmem:[%s1714_s4 + $0x28] sm:$0xff]  ;;  %vm844_vm3 = vcmask 195584   ;;  %vm853_vm4 = vcmask 261120  }
   0xe   : > { %410 = vmatpush.msra.mxu0 %v368_v1  ;;  %v1340_v2 = vld [vmem:[%s1337_s22] sm:$0xff]  ;;  %v1345_v3 = vld [vmem:[%s1337_s22 + $0x8] sm:$0xff]  ;;  %v1350_v4 = vld [vmem:[%s1337_s22 + $0x10] sm:$0xff]  ;;  %471 = vst.msk [vmem:[#allocation2 + $0x8] sm:$0x3] %vm470_vm2, %v1251_v5  ;;  %vm862_vm5 = vcmask 326656  }
   0xf   : > { %1183 = vmatmul.msk.f32.vlgmr.msra.gmra.mxu0 %vm370_vm0, %v1340_v2  ;;  %472 = vst.msk [vmem:[#allocation2 + $0x10] sm:$0xff] %vm468_vm1, %v1251_v5  ;;  %v1359_v6 = vld [vmem:[%s1337_s22 + $0x18] sm:$0xff]  ;;  %v1373_v8 = vld [vmem:[%s1337_s22 + $0x20] sm:$0xff]  ;;  %v1386_v9 = vld [vmem:[%s1337_s22 + $0x28] sm:$0xff]  ;;  %vm871_vm6 = vcmask 392192   ;;  %vm880_vm7 = vcmask 457728  }
  0x10   : > { %473 = vst.msk [vmem:[#allocation2 + $0x18] sm:$0x3] %vm470_vm2, %v1251_v5  ;;  %v1391_v10 = vld [vmem:[%s1337_s22 + $0x30] sm:$0xff]  ;;  %v1397_v12 = vld [vmem:[%s1337_s22 + $0x38] sm:$0xff]  ;;  %v906_v58 = vld [vmem:[%s1714_s4 + $0x40] sm:$0xff]  ;;  %vm889_vm8 = vcmask 523264   ;;  %s1679_s22 = scalar_lea.vmem %s1720_s10, %s1209_s19 }
  0x11   : > { %474 = vst.msk [vmem:[#allocation2 + $0x20] sm:$0xff] %vm468_vm1, %v1251_v5  ;;  %939 = vmatpush.msra.mxu1 %v906_v58  ;;  %1211 = vmatpush.msra.mxu3 %v906_v58  ;;  %v902_v1 = vld [vmem:[%s1714_s4 + $0x20] sm:$0xff]  ;;  %vm907_vm9 = vcmask 588800  }
  0x12   : > { %475 = vst.msk [vmem:[#allocation2 + $0x28] sm:$0x3] %vm470_vm2, %v1251_v5 }
  0x13   : > { %476 = vst.msk [vmem:[#allocation2 + $0x30] sm:$0xff] %vm468_vm1, %v1251_v5  ;;  %940 = vmatpush.msra.mxu1 %v905_v59  ;;  %1212 = vmatpush.msra.mxu3 %v905_v59 }
  0x14   : > { %477 = vst.msk [vmem:[#allocation2 + $0x38] sm:$0x3] %vm470_vm2, %v1251_v5 }
  0x15   : > { %v507_v7 = vld [vmem:[#allocation2 + $0x1] sm:$0xff]  ;;  %478 = vst.msk [vmem:[#allocation2 + $0x40] sm:$0xff] %vm468_vm1, %v1251_v5  ;;  %941 = vmatpush.msra.mxu1 %v904_v60  ;;  %1213 = vmatpush.msra.mxu3 %v904_v60 }
  0x16   : > { %580 = vrot.lane.b32.xlu0 %v507_v7, %s1252_s23  ;;  %479 = vst.msk [vmem:[#allocation2 + $0x48] sm:$0x3] %vm470_vm2, %v1251_v5  ;;  %v515_v11 = vld [vmem:[#allocation2 + $0x2] sm:$0xff] }
  0x17   : > { %1184 = vmatmul.msk.f32.gmra.mxu0 %vm370_vm0, %v1345_v3  ;;  %480 = vst.msk [vmem:[#allocation2 + $0x50] sm:$0xff] %vm468_vm1, %v1251_v5  ;;  %942 = vmatpush.msra.mxu1 %v903_v62 }
  0x18   : > { %481 = vst.msk [vmem:[#allocation2 + $0x58] sm:$0x3] %vm470_vm2, %v1251_v5  ;;  %1214 = vmatpush.msra.mxu3 %v903_v62 }
  0x19   : > { %482 = vst.msk [vmem:[#allocation2 + $0x60] sm:$0xff] %vm468_vm1, %v1251_v5  ;;  %943 = vmatpush.msra.mxu1 %v902_v1 }
  0x1a   : > { %483 = vst.msk [vmem:[#allocation2 + $0x68] sm:$0x3] %vm470_vm2, %v1251_v5  ;;  %1215 = vmatpush.msra.mxu3 %v902_v1 }
  0x1b   : > { %484 = vst.msk [vmem:[#allocation2 + $0x70] sm:$0xff] %vm468_vm1, %v1251_v5 }
  0x1c   : > { %485 = vst.msk [vmem:[#allocation2 + $0x78] sm:$0x3] %vm470_vm2, %v1251_v5 }
  0x1d   : > { %486 = vst.msk [vmem:[#allocation2 + $0x80] sm:$0xff] %vm468_vm1, %v1251_v5 }
  0x1e   : > { %487 = vst.msk [vmem:[#allocation2 + $0x88] sm:$0x3] %vm470_vm2, %v1251_v5  ;;  %612 = vrot.lane.b32.xlu0 %v515_v11, %s1253_s24  ;;  %v901_v11 = vld [vmem:[%s1714_s4 + $0x18] sm:$0xff] }
  0x1f   : > { %1185 = vmatmul.msk.f32.gmra.mxu0 %vm370_vm0, %v1350_v4  ;;  %488 = vst.msk [vmem:[#allocation2 + $0x90] sm:$0xff] %vm468_vm1, %v1251_v5  ;;  %944 = vmatpush.msra.mxu1 %v901_v11 }
  0x20   : > { %489 = vst.msk [vmem:[#allocation2 + $0x98] sm:$0x3] %vm470_vm2, %v1251_v5  ;;  %1216 = vmatpush.msra.mxu3 %v901_v11 }
  0x27   : > { %1186 = vmatmul.msk.f32.gmra.mxu0 %vm370_vm0, %v1359_v6 }
  0x2f   : > { %1187 = vmatmul.msk.f32.gmra.mxu0 %vm370_vm0, %v1373_v8 }
  0x37   : > { %1188 = vmatmul.msk.f32.gmra.mxu0 %vm370_vm0, %v1386_v9 }
  0x3f   : > { %1189 = vmatmul.msk.f32.gmra.mxu0 %vm370_vm0, %v1391_v10 }
  0x47   : > { %1190 = vmatmul.msk.f32.gmra.mxu0 %vm370_vm0, %v1397_v12 }
  0x8c   : > { %v412_v15 = vpop.f32.mrf.mxu0 }
  0x8d   : > { %v440_v16 = vmul.f32 %v1404_v13, %v412_v15 }
  0x8f   : > { %v452_v17 = vadd.f32 %v1409_v14, %v440_v16 }
  0x91   : > { %v460_v18 = vmax.f32 %v452_v17, 0.0  ;;  %v581_v17 = vpop.permute.xlu0 %580 }
  0x93   : > { %491 = vst.msk [vmem:[#allocation2 + $0x11] sm:$0xff] %vm468_vm1, %v460_v18 }
  0x94   : > { %v415_v19 = vpop.f32.mrf.mxu0 }
  0x95   : > { %v441_v20 = vmul.f32 %v1404_v13, %v415_v19  ;;  %v898_v19 = vld [vmem:[%s1714_s4] sm:$0xff] }
  0x97   : > { %v453_v21 = vadd.f32 %v1409_v14, %v441_v20 }
  0x99   : > { %v461_v22 = vmax.f32 %v453_v21, 0.0  ;;  %v613_v21 = vpop.permute.xlu0 %612 }
  0x9a   : > { %v539_v23 = vld [vmem:[#allocation2 + $0x12] sm:$0xff] }
  0x9b   : > { %v1416_v24 = vld [vmem:[#allocation2 + $0x10] sm:$0xff]  ;;  %492 = vst.msk [vmem:[#allocation2 + $0x21] sm:$0xff] %vm468_vm1, %v461_v22  ;;  %708 = vrot.lane.b32.xlu2 %v539_v23, %s1254_s29  ;;  %614 = vrot.lane.b32.xlu0 %v539_v23, %s1253_s24 }
  0x9c   : > { %644 = vrot.lane.b32.xlu1 %v1416_v24, %s1255_s30  ;;  %v418_v25 = vpop.f32.mrf.mxu0  ;;  %v531_v29 = vld [vmem:[#allocation2 + $0x11] sm:$0xff] }
  0x9d   : > { %v442_v26 = vmul.f32 %v1404_v13, %v418_v25 }
  0x9f   : > { %v454_v27 = vadd.f32 %v1409_v14, %v442_v26 }
  0xa1   : > { %v462_v28 = vmax.f32 %v454_v27, 0.0  ;;  %v499_v27 = vld [vmem:[#allocation2] sm:$0xff] }
  0xa2   : > { %v556_v30 = vld [vmem:[#allocation2 + $0x21] sm:$0xff] }
  0xa3   : > { %582 = vrot.lane.b32.xlu2 %v531_v29, %s1252_s23  ;;  %493 = vst.msk [vmem:[#allocation2 + $0x31] sm:$0xff] %vm468_vm1, %v462_v28  ;;  %772 = vrot.lane.b32.xlu0 %v556_v30, %s1257_s12  ;;  %v564_v34 = vld [vmem:[#allocation2 + $0x22] sm:$0xff] }
  0xa4   : > { %676 = vrot.lane.b32.xlu1 %v531_v29, %s1256_s11  ;;  %v421_v31 = vpop.f32.mrf.mxu0  ;;  %v1431_v35 = vld [vmem:[#allocation2 + $0x20] sm:$0xff] }
  0xa5   : > { %v443_v32 = vmul.f32 %v1404_v13, %v421_v31 }
  0xa7   : > { %v455_v33 = vadd.f32 %v1409_v14, %v443_v32 }
  0xa9   : > { %v463_v36 = vmax.f32 %v455_v33, 0.0 }
  0xaa   : > { %v565_v37 = vld [vmem:[#allocation2 + $0x32] sm:$0xff] }
  0xab   : > { %740 = vrot.lane.b32.xlu2 %v1431_v35, %s1259_s16  ;;  %494 = vst.msk [vmem:[#allocation2 + $0x41] sm:$0xff] %vm468_vm1, %v463_v36  ;;  %710 = vrot.lane.b32.xlu0 %v564_v34, %s1254_s29  ;;  %v1444_v41 = vld [vmem:[#allocation2 + $0x30] sm:$0xff] }
  0xac   : > { %804 = vrot.lane.b32.xlu1 %v564_v34, %s1258_s15  ;;  %v424_v38 = vpop.f32.mrf.mxu0  ;;  %v557_v43 = vld [vmem:[#allocation2 + $0x31] sm:$0xff] }
  0xad   : > { %v444_v39 = vmul.f32 %v1404_v13, %v424_v38 }
  0xaf   : > { %v456_v40 = vadd.f32 %v1409_v14, %v444_v39 }
  0xb1   : > { %v464_v42 = vmax.f32 %v456_v40, 0.0 }
  0xb2   : > { %v1455_v44 = vld [vmem:[#allocation2 + $0x40] sm:$0xff] }
  0xb3   : > { %678 = vrot.lane.b32.xlu2 %v556_v30, %s1256_s11  ;;  %806 = vrot.lane.b32.xlu0 %v565_v37, %s1258_s15  ;;  %495 = vst.msk [vmem:[#allocation2 + $0x51] sm:$0xff] %vm468_vm1, %v464_v42  ;;  %v566_v48 = vld [vmem:[#allocation2 + $0x42] sm:$0xff] }
  0xb4   : > { %646 = vrot.lane.b32.xlu1 %v1431_v35, %s1255_s30  ;;  %v427_v45 = vpop.f32.mrf.mxu0  ;;  %v534_v49 = vld [vmem:[#allocation2 + $0x41] sm:$0xff] }
  0xb5   : > { %v445_v46 = vmul.f32 %v1404_v13, %v427_v45 }
  0xb7   : > { %v457_v47 = vadd.f32 %v1409_v14, %v445_v46 }
  0xb9   : > { %v465_v50 = vmax.f32 %v457_v47, 0.0 }
  0xba   : > { %v559_v54 = vld [vmem:[#allocation2 + $0x51] sm:$0xff] }
  0xbb   : > { %616 = vrot.lane.b32.xlu2 %v564_v34, %s1253_s24  ;;  %648 = vrot.lane.b32.xlu0 %v1444_v41, %s1255_s30  ;;  %496 = vst.msk [vmem:[#allocation2 + $0x61] sm:$0xff] %vm468_vm1, %v465_v50  ;;  %v567_v56 = vld [vmem:[#allocation2 + $0x52] sm:$0xff] }
  0xbc   : > { %584 = vrot.lane.b32.xlu1 %v556_v30, %s1252_s23  ;;  %v430_v51 = vpop.f32.mrf.mxu0  ;;  %v1477_v57 = vld [vmem:[#allocation2 + $0x50] sm:$0xff]  ;;  %v828_v30 = vsel %vm468_vm1, %v499_v27, %v581_v17 }
  0xbd   : > { %v446_v52 = vmul.f32 %v1404_v13, %v430_v51  ;;  %v836_v32 = vsel %vm370_vm0, %v828_v30, %v613_v21 }
  0xbf   : > { %v458_v53 = vadd.f32 %v1409_v14, %v446_v52 }
  0xc1   : > { %v466_v55 = vmax.f32 %v458_v53, 0.0 }
  0xc2   : > { %v1504_v7 = vld [vmem:[#allocation2 + $0x60] sm:$0xff] }
  0xc3   : > { %774 = vrot.lane.b32.xlu2 %v557_v43, %s1257_s12  ;;  %586 = vrot.lane.b32.xlu0 %v557_v43, %s1252_s23  ;;  %497 = vst.msk [vmem:[#allocation2 + $0x71] sm:$0xff] %vm468_vm1, %v466_v55  ;;  %v544_v15 = vld [vmem:[#allocation2 + $0x62] sm:$0xff] }
  0xc4   : > { %742 = vrot.lane.b32.xlu1 %v1444_v41, %s1259_s16  ;;  %v433_v61 = vpop.f32.mrf.mxu0  ;;  %v536_v20 = vld [vmem:[#allocation2 + $0x61] sm:$0xff] }
  0xc5   : > { %v447_v0 = vmul.f32 %v1404_v13, %v433_v61  ;;  %v900_v13 = vld [vmem:[%s1714_s4 + $0x10] sm:$0xff] }
  0xc6   : > { %945 = vmatpush.msra.mxu1 %v900_v13  ;;  %1217 = vmatpush.msra.mxu3 %v900_v13  ;;  %v571_v61 = vld [vmem:[#allocation2 + $0x92] sm:$0xff] }
  0xc7   : > { %v459_v5 = vadd.f32 %v1409_v14, %v447_v0  ;;  %v899_v14 = vld [vmem:[%s1714_s4 + $0x8] sm:$0xff]  ;;  %v563_v13 = vld [vmem:[#allocation2 + $0x91] sm:$0xff] }
  0xc8   : > { %946 = vmatpush.msra.mxu1 %v899_v14  ;;  %1218 = vmatpush.msra.mxu3 %v899_v14 }
  0xc9   : > { %v467_v16 = vmax.f32 %v459_v5, 0.0 }
  0xca   : > { %947 = vmatpush.msra.mxu1 %v898_v19  ;;  %1219 = vmatpush.msra.mxu3 %v898_v19  ;;  %v1529_v23 = vld [vmem:[#allocation2 + $0x70] sm:$0xff] }
  0xcb   : > { %712 = vrot.lane.b32.xlu2 %v565_v37, %s1254_s29  ;;  %744 = vrot.lane.b32.xlu0 %v1455_v44, %s1259_s16  ;;  %498 = vst.msk [vmem:[#allocation2 + $0x81] sm:$0xff] %vm468_vm1, %v467_v16  ;;  %v569_v29 = vld [vmem:[#allocation2 + $0x72] sm:$0xff] }
  0xcc   : > { %680 = vrot.lane.b32.xlu1 %v557_v43, %s1256_s11  ;;  %v537_v31 = vld [vmem:[#allocation2 + $0x71] sm:$0xff] }
  0xcd   : > { %v555_v16 = vld [vmem:[#allocation2 + $0x90] sm:$0xff] }
  0xd2   : > { %v570_v52 = vld [vmem:[#allocation2 + $0x82] sm:$0xff] }
  0xd3   : > { %808 = vrot.lane.b32.xlu2 %v566_v48, %s1258_s15  ;;  %682 = vrot.lane.b32.xlu0 %v534_v49, %s1256_s11  ;;  %v554_v53 = vld [vmem:[#allocation2 + $0x80] sm:$0xff] }
  0xd4   : > { %618 = vrot.lane.b32.xlu1 %v565_v37, %s1253_s24 }
  0xdb   : > { %650 = vrot.lane.b32.xlu2 %v1455_v44, %s1255_s30  ;;  %620 = vrot.lane.b32.xlu0 %v566_v48, %s1253_s24 }
  0xdc   : > { %776 = vrot.lane.b32.xlu1 %v534_v49, %s1257_s12 }
  0xe3   : > { %588 = vrot.lane.b32.xlu2 %v534_v49, %s1252_s23  ;;  %778 = vrot.lane.b32.xlu0 %v559_v54, %s1257_s12 }
  0xe4   : > { %714 = vrot.lane.b32.xlu1 %v566_v48, %s1254_s29  ;;  %v562_v48 = vld [vmem:[#allocation2 + $0x81] sm:$0xff] }
  0xeb   : > { %746 = vrot.lane.b32.xlu2 %v1477_v57, %s1259_s16  ;;  %622 = vrot.lane.b32.xlu0 %v567_v56, %s1253_s24 }
  0xec   : > { %810 = vrot.lane.b32.xlu1 %v567_v56, %s1258_s15 }
  0xf3   : > { %652 = vrot.lane.b32.xlu2 %v1477_v57, %s1255_s30  ;;  %716 = vrot.lane.b32.xlu0 %v567_v56, %s1254_s29 }
  0xf4   : > { %590 = vrot.lane.b32.xlu1 %v559_v54, %s1252_s23 }
  0xf5   : > { %v709_v63 = vpop.permute.xlu2 %708 }
  0xfb   : > { %654 = vrot.lane.b32.xlu2 %v1504_v7, %s1255_s30  ;;  %718 = vrot.lane.b32.xlu0 %v544_v15, %s1254_s29 }
  0xfc   : > { %684 = vrot.lane.b32.xlu1 %v559_v54, %s1256_s11 }
  0xfd   : > { %v1520_v18 = vpop.permute.xlu2 %582 }
  0xfe   : > { %v829_v54 = vsel %vm468_vm1, %v1416_v24, %v1520_v18 }
 0x103   : > { %748 = vrot.lane.b32.xlu2 %v1504_v7, %s1259_s16  ;;  %812 = vrot.lane.b32.xlu0 %v544_v15, %s1258_s15 }
 0x104   : > { %686 = vrot.lane.b32.xlu1 %v536_v20, %s1256_s11 }
 0x105   : > { %v741_v22 = vpop.permute.xlu2 %740 }
 0x10b   : > { %750 = vrot.lane.b32.xlu2 %v1529_v23, %s1259_s16  ;;  %592 = vrot.lane.b32.xlu0 %v536_v20, %s1252_s23 }
 0x10c   : > { %780 = vrot.lane.b32.xlu1 %v536_v20, %s1257_s12 }
 0x10d   : > { %v679_v26 = vpop.permute.xlu2 %678  ;;  %v615_v28 = vpop.permute.xlu0 %614 }
 0x10e   : > { %v645_v25 = vpop.permute.xlu1 %644  ;;  %v837_v58 = vsel %vm370_vm0, %v829_v54, %v615_v28 }
 0x10f   : > { %v845_v33 = vsel %vm844_vm3, %v836_v32, %v645_v25 }
 0x113   : > { %814 = vrot.lane.b32.xlu2 %v569_v29, %s1258_s15  ;;  %688 = vrot.lane.b32.xlu0 %v537_v31, %s1256_s11 }
 0x114   : > { %624 = vrot.lane.b32.xlu1 %v544_v15, %s1253_s24 }
 0x115   : > { %v617_v36 = vpop.permute.xlu2 %616  ;;  %v773_v38 = vpop.permute.xlu0 %772 }
 0x116   : > { %v677_v34 = vpop.permute.xlu1 %676 }
 0x117   : > { %v854_v37 = vsel %vm853_vm4, %v845_v33, %v677_v34 }
 0x118   : > { %v863_v39 = vsel %vm862_vm5, %v854_v37, %v709_v63 }
 0x119   : > { %v872_v40 = vsel %vm871_vm6, %v863_v39, %v741_v22 }
 0x11a   : > { %v881_v42 = vsel %vm880_vm7, %v872_v40, %v773_v38 }
 0x11b   : > { %656 = vrot.lane.b32.xlu2 %v1529_v23, %s1255_s30  ;;  %626 = vrot.lane.b32.xlu0 %v569_v29, %s1253_s24 }
 0x11c   : > { %782 = vrot.lane.b32.xlu1 %v537_v31, %s1257_s12 }
 0x11d   : > { %v775_v45 = vpop.permute.xlu2 %774  ;;  %v711_v46 = vpop.permute.xlu0 %710 }
 0x11e   : > { %v805_v43 = vpop.permute.xlu1 %804 }
 0x11f   : > { %v890_v47 = vsel %vm889_vm8, %v881_v42, %v805_v43 }
 0x120   : > { %1191 = vmatmul.msk.f32.vlgmr.msra.gmra.mxu1 %vm907_vm9, %v890_v47 }
 0x123   : > { %594 = vrot.lane.b32.xlu2 %v537_v31, %s1252_s23  ;;  %784 = vrot.lane.b32.xlu0 %v562_v48, %s1257_s12 }
 0x124   : > { %720 = vrot.lane.b32.xlu1 %v569_v29, %s1254_s29 }
 0x125   : > { %v713_v50 = vpop.permute.xlu2 %712  ;;  %v807_v51 = vpop.permute.xlu0 %806 }
 0x126   : > { %v647_v49 = vpop.permute.xlu1 %646 }
 0x127   : > { %v846_v60 = vsel %vm844_vm3, %v837_v58, %v647_v49 }
 0x128   : > { %v855_v62 = vsel %vm853_vm4, %v846_v60, %v679_v26 }
 0x129   : > { %v864_v63 = vsel %vm862_vm5, %v855_v62, %v711_v46 }
 0x12b   : > { %752 = vrot.lane.b32.xlu2 %v554_v53, %s1259_s16  ;;  %722 = vrot.lane.b32.xlu0 %v570_v52, %s1254_s29 }
 0x12c   : > { %816 = vrot.lane.b32.xlu1 %v570_v52, %s1258_s15 }
 0x12d   : > { %v809_v56 = vpop.permute.xlu2 %808  ;;  %v649_v59 = vpop.permute.xlu0 %648 }
 0x12e   : > { %v585_v55 = vpop.permute.xlu1 %584 }
 0x12f   : > { %v830_v19 = vsel %vm468_vm1, %v1431_v35, %v585_v55 }
 0x130   : > { %v838_v20 = vsel %vm370_vm0, %v830_v19, %v617_v36 }
 0x131   : > { %v847_v22 = vsel %vm844_vm3, %v838_v20, %v649_v59 }
 0x133   : > { %690 = vrot.lane.b32.xlu2 %v562_v48, %s1256_s11  ;;  %818 = vrot.lane.b32.xlu0 %v571_v61, %s1258_s15 }
 0x134   : > { %658 = vrot.lane.b32.xlu1 %v554_v53, %s1255_s30 }
 0x135   : > { %v651_v24 = vpop.permute.xlu2 %650  ;;  %v587_v5 = vpop.permute.xlu0 %586 }
 0x136   : > { %v743_v0 = vpop.permute.xlu1 %742  ;;  %v831_v35 = vsel %vm468_vm1, %v1444_v41, %v587_v5 }
 0x137   : > { %v873_v1 = vsel %vm871_vm6, %v864_v63, %v743_v0 }
 0x138   : > { %v882_v11 = vsel %vm880_vm7, %v873_v1, %v775_v45 }
 0x139   : > { %v891_v15 = vsel %vm889_vm8, %v882_v11, %v807_v51 }
 0x13a   : > { %1192 = vmatmul.msk.f32.gmra.mxu1 %vm907_vm9, %v891_v15  ;;  %v1005_v15 = vld [vmem:[%s1717_s7] sm:$0xff] }
 0x13b   : > { %786 = vrot.lane.b32.xlu2 %v563_v13, %s1257_s12  ;;  %1045 = vmatpush.msra.mxu2 %v1005_v15 }
 0x13c   : > { %754 = vrot.lane.b32.xlu1 %v555_v16, %s1259_s16 }
 0x13d   : > { %v745_v14 = vpop.permute.xlu0 %744  ;;  %v589_v18 = vpop.permute.xlu2 %588 }
 0x13e   : > { %v681_v17 = vpop.permute.xlu1 %680  ;;  %v832_v55 = vsel %vm468_vm1, %v1455_v44, %v589_v18 }
 0x13f   : > { %v856_v26 = vsel %vm853_vm4, %v847_v22, %v681_v17 }
 0x140   : > { %v865_v28 = vsel %vm862_vm5, %v856_v26, %v713_v50 }
 0x141   : > { %v874_v29 = vsel %vm871_vm6, %v865_v28, %v745_v14 }
 0x145   : > { %v683_v25 = vpop.permute.xlu0 %682  ;;  %v747_v27 = vpop.permute.xlu2 %746 }
 0x146   : > { %v619_v21 = vpop.permute.xlu1 %618 }
 0x147   : > { %v839_v34 = vsel %vm370_vm0, %v831_v35, %v619_v21 }
 0x148   : > { %v848_v36 = vsel %vm844_vm3, %v839_v34, %v651_v24 }
 0x149   : > { %v857_v39 = vsel %vm853_vm4, %v848_v36, %v683_v25 }
 0x14d   : > { %v621_v32 = vpop.permute.xlu0 %620  ;;  %v653_v37 = vpop.permute.xlu2 %652 }
 0x14e   : > { %v777_v30 = vpop.permute.xlu1 %776 }
 0x14f   : > { %v883_v31 = vsel %vm880_vm7, %v874_v29, %v777_v30 }
 0x150   : > { %v892_v33 = vsel %vm889_vm8, %v883_v31, %v809_v56  ;;  %v840_v56 = vsel %vm370_vm0, %v832_v55, %v621_v32 }
 0x151   : > { %1193 = vmatmul.msk.f32.gmra.mxu1 %vm907_vm9, %v892_v33  ;;  %v849_v59 = vsel %vm844_vm3, %v840_v56, %v653_v37  ;;  %v1631_v37 = vld [vmem:[%s1716_s6] ss:$0 sm:$0xff] }
 0x155   : > { %v779_v40 = vpop.permute.xlu0 %778  ;;  %v655_v41 = vpop.permute.xlu2 %654 }
 0x156   : > { %v715_v38 = vpop.permute.xlu1 %714 }
 0x157   : > { %v866_v42 = vsel %vm862_vm5, %v857_v39, %v715_v38 }
 0x158   : > { %v875_v43 = vsel %vm871_vm6, %v866_v42, %v747_v27 }
 0x159   : > { %v884_v45 = vsel %vm880_vm7, %v875_v43, %v779_v40 }
 0x15d   : > { %v623_v47 = vpop.permute.xlu0 %622  ;;  %v749_v51 = vpop.permute.xlu2 %748 }
 0x15e   : > { %v811_v46 = vpop.permute.xlu1 %810 }
 0x15f   : > { %v893_v48 = vsel %vm889_vm8, %v884_v45, %v811_v46 }
 0x160   : > { %1194 = vmatmul.msk.f32.gmra.mxu1 %vm907_vm9, %v893_v48 }
 0x165   : > { %v717_v50 = vpop.permute.xlu0 %716  ;;  %v751_v54 = vpop.permute.xlu2 %750 }
 0x166   : > { %v591_v49 = vpop.permute.xlu1 %590 }
 0x167   : > { %v833_v44 = vsel %vm468_vm1, %v1477_v57, %v591_v49 }
 0x168   : > { %v841_v16 = vsel %vm370_vm0, %v833_v44, %v623_v47 }
 0x169   : > { %v850_v14 = vsel %vm844_vm3, %v841_v16, %v655_v41 }
 0x16d   : > { %v719_v53 = vpop.permute.xlu0 %718  ;;  %v815_v63 = vpop.permute.xlu2 %814 }
 0x16e   : > { %v685_v52 = vpop.permute.xlu1 %684 }
 0x16f   : > { %v858_v61 = vsel %vm853_vm4, %v849_v59, %v685_v52 }
 0x170   : > { %v867_v62 = vsel %vm862_vm5, %v858_v61, %v717_v50 }
 0x171   : > { %v876_v24 = vsel %vm871_vm6, %v867_v62, %v749_v51 }
 0x175   : > { %v813_v60 = vpop.permute.xlu0 %812  ;;  %v657_v13 = vpop.permute.xlu2 %656 }
 0x176   : > { %v687_v58 = vpop.permute.xlu1 %686 }
 0x177   : > { %v859_v18 = vsel %vm853_vm4, %v850_v14, %v687_v58 }
 0x178   : > { %v868_v20 = vsel %vm862_vm5, %v859_v18, %v719_v53 }
 0x179   : > { %v877_v57 = vsel %vm871_vm6, %v868_v20, %v751_v54 }
 0x17d   : > { %v593_v5 = vpop.permute.xlu0 %592  ;;  %v595_v26 = vpop.permute.xlu2 %594 }
 0x17e   : > { %v781_v0 = vpop.permute.xlu1 %780  ;;  %v834_v25 = vsel %vm468_vm1, %v1504_v7, %v593_v5  ;;  %v1625_v7 = vld [vmem:[%s1715_s5] ss:$0 sm:$0xff]  ;;  %v835_v47 = vsel %vm468_vm1, %v1529_v23, %v595_v26 }
 0x17f   : > { %v885_v1 = vsel %vm880_vm7, %v876_v24, %v781_v0  ;;  %v1241_v26 = vld [vmem:[%s1718_s8] ss:$0 sm:$0xff] }
 0x180   : > { %v894_v11 = vsel %vm889_vm8, %v885_v1, %v813_v60 }
 0x181   : > { %1195 = vmatmul.msk.f32.gmra.mxu1 %vm907_vm9, %v894_v11 }
 0x185   : > { %v689_v19 = vpop.permute.xlu0 %688  ;;  %v753_v33 = vpop.permute.xlu2 %752 }
 0x186   : > { %v625_v17 = vpop.permute.xlu1 %624 }
 0x187   : > { %v842_v28 = vsel %vm370_vm0, %v834_v25, %v625_v17 }
 0x188   : > { %v851_v30 = vsel %vm844_vm3, %v842_v28, %v657_v13  ;;  %v1242_v28 = vld [vmem:[%s1719_s9] ss:$0 sm:$0xff] }
 0x189   : > { %v860_v32 = vsel %vm853_vm4, %v851_v30, %v689_v19 }
 0x18d   : > { %v627_v29 = vpop.permute.xlu0 %626  ;;  %v691_v46 = vpop.permute.xlu2 %690 }
 0x18e   : > { %v783_v21 = vpop.permute.xlu1 %782  ;;  %v843_v50 = vsel %vm370_vm0, %v835_v47, %v627_v29 }
 0x18f   : > { %v886_v22 = vsel %vm880_vm7, %v877_v57, %v783_v21 }
 0x190   : > { %v895_v27 = vsel %vm889_vm8, %v886_v22, %v815_v63 }
 0x191   : > { %1196 = vmatmul.msk.f32.vlgmr.msra.gmra.mxu3 %vm907_vm9, %v895_v27 }
 0x195   : > { %v785_v36 = vpop.permute.xlu0 %784  ;;  %v787_v53 = vpop.permute.xlu2 %786 }
 0x196   : > { %v721_v31 = vpop.permute.xlu1 %720 }
 0x197   : > { %v869_v35 = vsel %vm862_vm5, %v860_v32, %v721_v31 }
 0x198   : > { %v878_v34 = vsel %vm871_vm6, %v869_v35, %v753_v33 }
 0x199   : > { %v887_v39 = vsel %vm880_vm7, %v878_v34, %v785_v36 }
 0x19d   : > { %v949_v38 = vpop.f32.mrf.mxu1  ;;  %v723_v48 = vpop.permute.xlu0 %722 }
 0x19e   : > { %v977_v40 = vmul.f32 %v1625_v7, %v949_v38  ;;  %v817_v42 = vpop.permute.xlu1 %816 }
 0x19f   : > { %v896_v43 = vsel %vm889_vm8, %v887_v39, %v817_v42 }
 0x1a0   : > { %v989_v45 = vadd.f32 %v1631_v37, %v977_v40  ;;  %1197 = vmatmul.msk.f32.gmra.mxu3 %vm907_vm9, %v896_v43 }
 0x1a2   : > { %v997_v41 = vmax.f32 %v989_v45, 0.0 }
 0x1a4   : > { %1199 = vmatmul.msk.f32.vlgmr.msra.gmra.mxu2 %vm468_vm1, %v997_v41 }
 0x1a5   : > { %v819_v56 = vpop.permute.xlu0 %818 }
 0x1a6   : > { %v659_v49 = vpop.permute.xlu1 %658 }
 0x1a7   : > { %v852_v51 = vsel %vm844_vm3, %v843_v50, %v659_v49 }
 0x1a8   : > { %v861_v52 = vsel %vm853_vm4, %v852_v51, %v691_v46 }
 0x1a9   : > { %v870_v54 = vsel %vm862_vm5, %v861_v52, %v723_v48 }
 0x1ae   : > { %v755_v55 = vpop.permute.xlu1 %754 }
 0x1af   : > { %v879_v58 = vsel %vm871_vm6, %v870_v54, %v755_v55 }
 0x1b0   : > { %v888_v59 = vsel %vm880_vm7, %v879_v58, %v787_v53 }
 0x1b1   : > { %v897_v60 = vsel %vm889_vm8, %v888_v59, %v819_v56 }
 0x1b2   : > { %1198 = vmatmul.msk.f32.gmra.mxu3 %vm907_vm9, %v897_v60 }
 0x1b7   : > { %v952_v23 = vpop.f32.mrf.mxu1 }
 0x1b8   : > { %v978_v61 = vmul.f32 %v1625_v7, %v952_v23 }
 0x1ba   : > { %v990_v62 = vadd.f32 %v1631_v37, %v978_v61 }
 0x1bc   : > { %v998_v63 = vmax.f32 %v990_v62, 0.0 }
 0x1be   : > { %1200 = vmatmul.msk.f32.gmra.mxu2 %vm468_vm1, %v998_v63 }
 0x1ce   : > { %v955_v0 = vpop.f32.mrf.mxu1 }
 0x1cf   : > { %v979_v24 = vmul.f32 %v1625_v7, %v955_v0 }
 0x1d1   : > { %v991_v1 = vadd.f32 %v1631_v37, %v979_v24 }
 0x1d3   : > { %v999_v5 = vmax.f32 %v991_v1, 0.0 }
 0x1d5   : > { %1201 = vmatmul.msk.f32.gmra.mxu2 %vm468_vm1, %v999_v5 }
 0x1dd   : > { %v958_v11 = vpop.f32.mrf.mxu1 }
 0x1de   : > { %v980_v44 = vmul.f32 %v1625_v7, %v958_v11 }
 0x1e0   : > { %v992_v15 = vadd.f32 %v1631_v37, %v980_v44 }
 0x1e2   : > { %v1000_v16 = vmax.f32 %v992_v15, 0.0 }
 0x1e4   : > { %1202 = vmatmul.msk.f32.gmra.mxu2 %vm468_vm1, %v1000_v16 }
 0x1fe   : > { %v961_v13 = vpop.f32.mrf.mxu1 }
 0x1ff   : > { %v981_v17 = vmul.f32 %v1625_v7, %v961_v13 }
 0x201   : > { %v993_v14 = vadd.f32 %v1631_v37, %v981_v17 }
 0x203   : > { %v1001_v18 = vmax.f32 %v993_v14, 0.0 }
 0x205   : > { %1203 = vmatmul.msk.f32.gmra.mxu2 %vm468_vm1, %v1001_v18 }
 0x214   : > { %v964_v19 = vpop.f32.mrf.mxu3 }
 0x215   : > { %v982_v20 = vmul.f32 %v1625_v7, %v964_v19 }
 0x217   : > { %v994_v21 = vadd.f32 %v1631_v37, %v982_v20 }
 0x219   : > { %v1002_v57 = vmax.f32 %v994_v21, 0.0 }
 0x21b   : > { %1204 = vmatmul.msk.f32.gmra.mxu2 %vm468_vm1, %v1002_v57 }
 0x223   : > { %v967_v22 = vpop.f32.mrf.mxu3 }
 0x224   : > { %v983_v25 = vmul.f32 %v1625_v7, %v967_v22 }
 0x226   : > { %v995_v27 = vadd.f32 %v1631_v37, %v983_v25 }
 0x227   : > { %v1047_v29 = vpop.f32.mrf.mxu2 }
 0x228   : > { %v1003_v30 = vmax.f32 %v995_v27, 0.0  ;;  %v1075_v31 = vmul.f32 %v1241_v26, %v1047_v29 }
 0x22a   : > { %v1087_v32 = vadd.f32 %v1242_v28, %v1075_v31  ;;  %1205 = vmatmul.msk.f32.gmra.mxu2 %vm468_vm1, %v1003_v30 }
 0x22c   : > { %v1095_v35 = vadd.f32 %v1087_v32, %v1340_v2 }
 0x22e   : > { %v1103_v33 = vmax.f32 %v1095_v35, 0.0 }
 0x230   : > { %1111 = vst.msk [vmem:[%s1679_s22] sm:$0xff] %vm370_vm0, %v1103_v33 }
 0x235   : > { %v970_v34 = vpop.f32.mrf.mxu3 }
 0x236   : > { %v984_v36 = vmul.f32 %v1625_v7, %v970_v34 }
 0x238   : > { %v996_v38 = vadd.f32 %v1631_v37, %v984_v36 }
 0x23a   : > { %v1004_v39 = vmax.f32 %v996_v38, 0.0 }
 0x23c   : > { %1206 = vmatmul.msk.f32.gmra.mxu2 %vm468_vm1, %v1004_v39 }
 0x241   : > { %v1050_v2 = vpop.f32.mrf.mxu2 }
 0x242   : > { %v1076_v40 = vmul.f32 %v1241_v26, %v1050_v2 }
 0x244   : > { %v1088_v42 = vadd.f32 %v1242_v28, %v1076_v40 }
 0x246   : > { %v1096_v43 = vadd.f32 %v1088_v42, %v1345_v3 }
 0x248   : > { %v1104_v45 = vmax.f32 %v1096_v43, 0.0 }
 0x24a   : > { %1112 = vst.msk [vmem:[%s1679_s22 + $0x8] sm:$0xff] %vm370_vm0, %v1104_v45 }
 0x258   : > { %v1053_v41 = vpop.f32.mrf.mxu2 }
 0x259   : > { %v1077_v46 = vmul.f32 %v1241_v26, %v1053_v41 }
 0x25b   : > { %v1089_v47 = vadd.f32 %v1242_v28, %v1077_v46 }
 0x25d   : > { %v1097_v7 = vadd.f32 %v1089_v47, %v1350_v4 }
 0x25f   : > { %v1105_v48 = vmax.f32 %v1097_v7, 0.0 }
 0x261   : > { %1113 = vst.msk [vmem:[%s1679_s22 + $0x10] sm:$0xff] %vm370_vm0, %v1105_v48 }
 0x267   : > { %v1056_v37 = vpop.f32.mrf.mxu2 }
 0x268   : > { %v1078_v49 = vmul.f32 %v1241_v26, %v1056_v37 }
 0x26a   : > { %v1090_v50 = vadd.f32 %v1242_v28, %v1078_v49 }
 0x26c   : > { %v1098_v51 = vadd.f32 %v1090_v50, %v1359_v6 }
 0x26e   : > { %v1106_v52 = vmax.f32 %v1098_v51, 0.0 }
 0x270   : > { %1114 = vst.msk [vmem:[%s1679_s22 + $0x18] sm:$0xff] %vm370_vm0, %v1106_v52 }
 0x288   : > { %v1059_v3 = vpop.f32.mrf.mxu2 }
 0x289   : > { %v1079_v53 = vmul.f32 %v1241_v26, %v1059_v3 }
 0x28b   : > { %v1091_v54 = vadd.f32 %v1242_v28, %v1079_v53 }
 0x28d   : > { %v1099_v55 = vadd.f32 %v1091_v54, %v1373_v8 }
 0x28f   : > { %v1107_v56 = vmax.f32 %v1099_v55, 0.0 }
 0x291   : > { %1115 = vst.msk [vmem:[%s1679_s22 + $0x20] sm:$0xff] %vm370_vm0, %v1107_v56 }
 0x29e   : > { %v1062_v4 = vpop.f32.mrf.mxu2 }
 0x29f   : > { %v1080_v58 = vmul.f32 %v1241_v26, %v1062_v4 }
 0x2a1   : > { %v1092_v59 = vadd.f32 %v1242_v28, %v1080_v58 }
 0x2a3   : > { %v1100_v60 = vadd.f32 %v1092_v59, %v1386_v9 }
 0x2a5   : > { %v1108_v23 = vmax.f32 %v1100_v60, 0.0 }
 0x2a7   : > { %1116 = vst.msk [vmem:[%s1679_s22 + $0x28] sm:$0xff] %vm370_vm0, %v1108_v23 }
 0x2ad   : > { %v1065_v6 = vpop.f32.mrf.mxu2 }
 0x2ae   : > { %v1081_v61 = vmul.f32 %v1241_v26, %v1065_v6 }
 0x2b0   : > { %v1093_v62 = vadd.f32 %v1242_v28, %v1081_v61 }
 0x2b2   : > { %v1101_v63 = vadd.f32 %v1093_v62, %v1391_v10 }
 0x2b4   : > { %v1109_v0 = vmax.f32 %v1101_v63, 0.0 }
 0x2b6   : > { %1117 = vst.msk [vmem:[%s1679_s22 + $0x30] sm:$0xff] %vm370_vm0, %v1109_v0 }
 0x2bf   : > { %v1068_v8 = vpop.f32.mrf.mxu2 }
 0x2c0   : > { %v1082_v24 = vmul.f32 %v1241_v26, %v1068_v8 }
 0x2c2   : > { %v1094_v1 = vadd.f32 %v1242_v28, %v1082_v24 }
 0x2c4   : > { %v1102_v5 = vadd.f32 %v1094_v1, %v1397_v12 }
 0x2c6   : > { %v1110_v11 = vmax.f32 %v1102_v5, 0.0 }
 0x2c8   : > { %1118 = vst.msk [vmem:[%s1679_s22 + $0x38] sm:$0xff] %vm370_vm0, %v1110_v11 }
 0x2c9 PF: > { %s20_s13 = sadd.s32 1, %s1249_s13  }
 0x2ca   : > { %p17_p4 = scmp.ge.s32.totalorder %s20_s13, 4  }
 0x2cc   :  { %19 = sbr.rel (!%p17_p4) target bundleno = 1 (0x1), region = 92 }

</bundles_post_ra>
